<compile_context>
chip_gen: v5e
topology: v5e:2x2
jax: 0.10.0
libtpu: 0.0.40
codegen_flags: <defaults>
</compile_context>

<pallas_src>
import functools

import jax
import jax.numpy as jnp
from jax.experimental import pallas as pl
from jax.experimental.pallas import tpu as pltpu


def _layer_norm_kernel(x_ref, scale_ref, shift_ref, o_ref, *, epsilon, hidden_true):
    # x_ref: (tile_rows, hidden_pad); scale/shift: (1, hidden_pad) f32, resident
    # across the whole grid (constant index_map).
    #
    # Rows are fully independent.  The last grid step may carry an undefined
    # padded tail of rows; any Inf/NaN produced there is discarded on writeback
    # -- do not misread those as bugs under interpret / debug_check runs.
    x = x_ref[...].astype(jnp.float32)
    h_pad = x.shape[-1]
    inv_n = jnp.float32(1.0 / hidden_true)

    if hidden_true != h_pad:
        # hidden was zero-padded to a multiple of 128 in the wrapper: mask the
        # padded lanes out of the row statistics (static Python branch -> no
        # cost in the lane-dense production path).
        lane = jax.lax.broadcasted_iota(jnp.int32, x.shape, x.ndim - 1)
        valid = lane < hidden_true
        x = jnp.where(valid, x, 0.0)

    # Two-pass (centered) statistics: mean, then population variance of
    # (x - mean), exactly mirroring PyTorch mean()/var(unbiased=False).
    mean = jnp.sum(x, axis=-1, keepdims=True) * inv_n
    xc = x - mean
    if hidden_true != h_pad:
        xc = jnp.where(valid, xc, 0.0)
    var = jnp.sum(xc * xc, axis=-1, keepdims=True) * inv_n
    inv_std = jax.lax.rsqrt(var + jnp.float32(epsilon))

    y = xc * inv_std
    o_ref[...] = (scale_ref[...] * y + shift_ref[...]).astype(o_ref.dtype)
    # Note: if a v7x bundle dump ever shows the VALU slot binding (HBM ~3.2
    # TB/s feeds more elem/s than ~9 VPU ops/elem allow), the row-sum
    # reductions can be offloaded to the idle MXU via jnp.dot with a ones
    # matrix; left out here since v5e/v6e are HBM-bound with this code.


def _tpu_vmem_and_cores():
    """Best-effort (vmem_capacity_bytes, tensorcores_per_chip)."""
    vmem = None
    try:
        vmem = int(pltpu.get_tpu_info().vmem_capacity_bytes)
    except Exception:
        vmem = None
    kind = ""
    try:
        kind = jax.devices()[0].device_kind.lower()
    except Exception:
        pass
    is_v7 = "v7" in kind
    if vmem is None:
        vmem = (64 if is_v7 else 128) * 1024 * 1024
    num_tc = 2 if (is_v7 or vmem <= 80 * 1024 * 1024) else 1
    return vmem, num_tc


def _pick_tile_rows(rows, hidden, in_dtype, out_dtype, budget_bytes, num_tc):
    """Largest sublane-aligned row tile whose footprint fits budget_bytes.

    Footprint = double-buffered in+out DMA buffers + ~3 f32 temporaries
    (x.astype(f32), centered copy, normalized result) that cannot live in the
    64-vreg register file for tiles this size.  The tile is then shrunk, if
    needed, so the grid has at least `num_tc` steps (keeps both v7x TCs busy).
    """
    in_b = jnp.dtype(in_dtype).itemsize
    out_b = jnp.dtype(out_dtype).itemsize
    # Sublane packing: f32 -> 8 rows, bf16 -> 16, int8/fp8 -> 32.
    row_align = max(8, 32 // max(1, min(in_b, out_b)))
    bytes_per_row = hidden * (in_b + out_b) * 2 + hidden * 4 * 3
    max_rows = max(row_align, budget_bytes // max(bytes_per_row, 1))
    # v7x (2 TCs, 64 MiB VMEM) keeps the tighter cap; v5e/v6e let the budget bind.
    cap = 1024 if num_tc > 1 else 4096
    tile = min(cap, max_rows)
    tile = max(row_align, (tile // row_align) * row_align)
    if rows <= tile:
        # Problem fits in one tile: split it so each TensorCore gets a block.
        per_core = pl.cdiv(rows, num_tc)
        tile = max(row_align, ((per_core + row_align - 1) // row_align) * row_align)
    return tile


def layer_normalization(x, scale, shift, *, epsilon=1e-5, tile_rows=None):
    """LayerNorm over the last axis of x, mirroring the PyTorch module.

    x:     (..., hidden)
    scale: (hidden,)
    shift: (hidden,)
    """
    orig_shape = x.shape
    hidden = orig_shape[-1]
    rows = 1
    for d in orig_shape[:-1]:
        rows *= d
    x2d = x.reshape(rows, hidden)
    out_dtype = x.dtype

    # Lane-dense layout: pad hidden to a multiple of 128 so writebacks are
    # unmasked vst (biggest measured store-path lever).  Production shapes
    # (hidden % 128 == 0) skip the pad/slice copies entirely.
    hidden_pad = ((hidden + 127) // 128) * 128
    scale_f32 = scale.reshape(1, hidden).astype(jnp.float32)
    shift_f32 = shift.reshape(1, hidden).astype(jnp.float32)
    if hidden_pad != hidden:
        pad = hidden_pad - hidden
        x2d = jnp.pad(x2d, ((0, 0), (0, pad)))
        scale_f32 = jnp.pad(scale_f32, ((0, 0), (0, pad)))
        shift_f32 = jnp.pad(shift_f32, ((0, 0), (0, pad)))

    vmem_bytes, num_tc = _tpu_vmem_and_cores()
    # Generation-aware scoped-VMEM limit (~38 MiB on v7x, ~77 MiB on v5e/v6e).
    vmem_limit = int(min(int(vmem_bytes * 0.6), 100 * 1024 * 1024))
    if tile_rows is None:
        tile_rows = _pick_tile_rows(rows, hidden_pad, x.dtype, out_dtype,
                                    int(vmem_limit * 0.75), num_tc)

    grid = (pl.cdiv(rows, tile_rows),)
    kernel = functools.partial(_layer_norm_kernel, epsilon=epsilon,
                               hidden_true=hidden)

    in_b = jnp.dtype(x.dtype).itemsize
    out_b = jnp.dtype(out_dtype).itemsize
    cost = pl.CostEstimate(
        flops=9 * rows * hidden,
        transcendentals=rows,
        bytes_accessed=rows * hidden_pad * (in_b + out_b) + 2 * hidden_pad * 4,
    )

    out = pl.pallas_call(
        kernel,
        out_shape=jax.ShapeDtypeStruct((rows, hidden_pad), out_dtype),
        grid_spec=pltpu.PrefetchScalarGridSpec(
            num_scalar_prefetch=0,
            grid=grid,
            in_specs=[
                pl.BlockSpec((tile_rows, hidden_pad), lambda i: (i, 0)),
                pl.BlockSpec((1, hidden_pad), lambda i: (0, 0)),
                pl.BlockSpec((1, hidden_pad), lambda i: (0, 0)),
            ],
            out_specs=pl.BlockSpec((tile_rows, hidden_pad), lambda i: (i, 0)),
        ),
        compiler_params=pltpu.CompilerParams(
            dimension_semantics=("parallel",),   # rows shard across v7x's 2 TCs
            vmem_limit_bytes=vmem_limit,
        ),
        cost_estimate=cost,
    )(x2d, scale_f32, shift_f32)

    if hidden_pad != hidden:
        out = out[:, :hidden]
    return out.reshape(orig_shape)


def _reference_layer_norm(x, scale, shift, epsilon=1e-5):
    x32 = x.astype(jnp.float32)
    mean = jnp.mean(x32, axis=-1, keepdims=True)
    var = jnp.mean((x32 - mean) ** 2, axis=-1, keepdims=True)
    y = (x32 - mean) / jnp.sqrt(var + epsilon)
    return (scale * y + shift).astype(x.dtype)


if __name__ == "__main__":
    key = jax.random.PRNGKey(0)

    # Case 1: module-sized small shape (hidden=32 exercises the lane-padding path).
    batch, seq, hidden = 2, 8, 32
    x = jax.random.normal(key, (batch, seq, hidden), dtype=jnp.float32)
    # Deterministic parameter init, matching nn.Parameter(torch.ones/zeros(dim)).
    scale = jnp.ones((hidden,), dtype=jnp.float32)
    shift = jnp.zeros((hidden,), dtype=jnp.float32)
    out = jax.block_until_ready(layer_normalization(x, scale, shift))
    ref = _reference_layer_norm(x, scale, shift)
    assert out.shape == x.shape, (out.shape, x.shape)
    assert jnp.allclose(out, ref, atol=1e-5, rtol=1e-5), "mismatch (padded-hidden case)"

    # Case 2: lane-dense hidden (multiple of 128), a partial last row block,
    # non-trivial scale/shift, and a mean offset (exercises two-pass variance).
    k1, k2 = jax.random.split(key)
    x2 = 3.0 + jax.random.normal(k1, (3, 37, 256), dtype=jnp.float32)
    scale2 = 1.0 + 0.1 * jax.random.normal(k2, (256,), dtype=jnp.float32)
    shift2 = 0.5 * jnp.ones((256,), dtype=jnp.float32)
    out2 = jax.block_until_ready(layer_normalization(x2, scale2, shift2))
    ref2 = _reference_layer_norm(x2, scale2, shift2)
    assert out2.shape == x2.shape, (out2.shape, x2.shape)
    assert jnp.allclose(out2, ref2, atol=1e-5, rtol=1e-5), "mismatch (lane-dense case)"

    print("KERNEL_OK")
</pallas_src>

<mosaic_0001>
module attributes {stable_mosaic.version = 11 : i64} {
  func.func @_layer_norm_kernel(%arg0: i32, %arg1: memref<16x128xf32, #tpu.memory_space<vmem>>, %arg2: memref<1x128xf32, #tpu.memory_space<vmem>>, %arg3: memref<1x128xf32, #tpu.memory_space<vmem>>, %arg4: memref<16x128xf32, #tpu.memory_space<vmem>>) attributes {dimension_semantics = [#tpu.dimension_semantics<parallel>], iteration_bounds = array<i64: 1>, scalar_prefetch = 0 : i64, scratch_operands = 0 : i64, tpu.core_type = #tpu.core_type<tc>, window_params = [{transform_indices = @transform_0, window_bounds = array<i64: 16, 128>}, {pipeline_mode = #tpu.pipeline_mode<synchronous>, transform_indices = @transform_1, window_bounds = array<i64: 1, 128>}, {pipeline_mode = #tpu.pipeline_mode<synchronous>, transform_indices = @transform_2, window_bounds = array<i64: 1, 128>}, {transform_indices = @transform_3, window_bounds = array<i64: 16, 128>}]} {
    %c0 = arith.constant 0 : index
    %c0_0 = arith.constant 0 : index
    %0 = vector.load %arg1[%c0, %c0_0] : memref<16x128xf32, #tpu.memory_space<vmem>>, vector<16x128xf32>
    %1 = tpu.iota {dimensions = array<i32: 1>} : vector<16x128xi32>
    %c32_i32 = arith.constant 32 : i32
    %2 = vector.broadcast %c32_i32 : i32 to vector<16x128xi32>
    %3 = arith.cmpi slt, %1, %2 : vector<16x128xi32>
    %cst = arith.constant 0.000000e+00 : f32
    %4 = vector.broadcast %cst : f32 to vector<16x128xf32>
    %5 = arith.select %3, %0, %4 : vector<16x128xi1>, vector<16x128xf32>
    %cst_1 = arith.constant dense<0.000000e+00> : vector<16xf32>
    %6 = vector.multi_reduction <add>, %5, %cst_1 [1] : vector<16x128xf32> to vector<16xf32>
    %7 = vector.shape_cast %6 : vector<16xf32> to vector<16x1xf32>
    %cst_2 = arith.constant 3.125000e-02 : f32
    %8 = vector.broadcast %cst_2 : f32 to vector<16x1xf32>
    %9 = arith.mulf %7, %8 : vector<16x1xf32>
    %10 = vector.broadcast %9 : vector<16x1xf32> to vector<16x128xf32>
    %11 = arith.subf %5, %10 : vector<16x128xf32>
    %cst_3 = arith.constant 0.000000e+00 : f32
    %12 = vector.broadcast %cst_3 : f32 to vector<16x128xf32>
    %13 = arith.select %3, %11, %12 : vector<16x128xi1>, vector<16x128xf32>
    %14 = arith.mulf %13, %13 : vector<16x128xf32>
    %cst_4 = arith.constant dense<0.000000e+00> : vector<16xf32>
    %15 = vector.multi_reduction <add>, %14, %cst_4 [1] : vector<16x128xf32> to vector<16xf32>
    %16 = vector.shape_cast %15 : vector<16xf32> to vector<16x1xf32>
    %cst_5 = arith.constant 3.125000e-02 : f32
    %17 = vector.broadcast %cst_5 : f32 to vector<16x1xf32>
    %18 = arith.mulf %16, %17 : vector<16x1xf32>
    %cst_6 = arith.constant 9.99999974E-6 : f32
    %19 = vector.broadcast %cst_6 : f32 to vector<16x1xf32>
    %20 = arith.addf %18, %19 : vector<16x1xf32>
    %21 = math.rsqrt %20 : vector<16x1xf32>
    %22 = vector.broadcast %21 : vector<16x1xf32> to vector<16x128xf32>
    %23 = arith.mulf %13, %22 : vector<16x128xf32>
    %c0_7 = arith.constant 0 : index
    %c0_8 = arith.constant 0 : index
    %24 = vector.load %arg2[%c0_7, %c0_8] : memref<1x128xf32, #tpu.memory_space<vmem>>, vector<1x128xf32>
    %25 = vector.broadcast %24 : vector<1x128xf32> to vector<16x128xf32>
    %26 = arith.mulf %25, %23 : vector<16x128xf32>
    %c0_9 = arith.constant 0 : index
    %c0_10 = arith.constant 0 : index
    %27 = vector.load %arg3[%c0_9, %c0_10] : memref<1x128xf32, #tpu.memory_space<vmem>>, vector<1x128xf32>
    %28 = vector.broadcast %27 : vector<1x128xf32> to vector<16x128xf32>
    %29 = arith.addf %26, %28 : vector<16x128xf32>
    %c0_11 = arith.constant 0 : index
    %c0_12 = arith.constant 0 : index
    %30 = vector.load %arg4[%c0_11, %c0_12] : memref<16x128xf32, #tpu.memory_space<vmem>>, vector<16x128xf32>
    tpu.vector_store %arg4[%c0_11, %c0_12], %29 {strides = array<i32>} : memref<16x128xf32, #tpu.memory_space<vmem>>, vector<16x128xf32>,
    return
  }
  func.func @transform_0(%arg0: i32) -> (i32, i32) {
    %c0_i32 = arith.constant 0 : i32
    %c0_i32_0 = arith.constant 0 : i32
    return %arg0, %c0_i32 : i32, i32
  }
  func.func @transform_1(%arg0: i32) -> (i32, i32) {
    %c0_i32 = arith.constant 0 : i32
    %c0_i32_0 = arith.constant 0 : i32
    %c0_i32_1 = arith.constant 0 : i32
    return %c0_i32, %c0_i32_0 : i32, i32
  }
  func.func @transform_2(%arg0: i32) -> (i32, i32) {
    %c0_i32 = arith.constant 0 : i32
    %c0_i32_0 = arith.constant 0 : i32
    %c0_i32_1 = arith.constant 0 : i32
    return %c0_i32, %c0_i32_0 : i32, i32
  }
  func.func @transform_3(%arg0: i32) -> (i32, i32) {
    %c0_i32 = arith.constant 0 : i32
    %c0_i32_0 = arith.constant 0 : i32
    return %arg0, %c0_i32 : i32, i32
  }
}

</mosaic_0001>

<bundles_post_ra>
// kernel: tpu_custom_call.1
= control target key start
LH: loop header
LB: loop body
LE: loop exit
PB: predicated region body
PF: predicated region fallthrough
CT: control target
= control target key end

     0   :  { %8 = vsyncpa [#allocation3], 0  ;;  %s264_s0 = inlined_call_operand.hbm [shape: f32[16,128], index: 0, kind: input, shape index: {}]   ;;  %s265_s1 = inlined_call_operand.hbm [shape: f32[1,128], index: 1, kind: input, shape index: {}]   ;;  %s266_s2 = inlined_call_operand.vmem [shape: f32[1,128], index: 2, kind: input, shape index: {}]   ;;  %s267_s3 = inlined_call_operand.hbm [shape: f32[16,128], index: 3, kind: output, shape index: {}]  }
   0x1   :  { %9 = vsyncpa [#allocation6], 0 }
   0x2   :  { %10 = vsyncpa [#allocation4], 0  ;;  %s15_s14 = sshll.u32 %s264_s0, 4  ;;  %s217_s15 = smov [#allocation2]   ;;  %s16_s14 = int_to_ptr.hbm [resolvable:$true] %s15_s14 }
   0x3   :  { %s17_s16 = sshll.u32 %s217_s15, 4  ;;  %s29_s19 = sshll.u32 %s265_s1, 4  ;;  %s18_s16 = int_to_ptr.vmem [resolvable:$true] %s17_s16  ;;  %s30_s19 = int_to_ptr.hbm [resolvable:$true] %s29_s19 }
   0x4   :  { %s218_s20 = smov 128   ;;  %s219_s21 = smov 8  }
   0x5   :  { %23 = dma.hbm_to_vmem [thread:$0]  %s16_s14, 256, %s18_s16, [#allocation3], %s218_s20, %s218_s20, %s219_s21  }
   0x6   :  { %s220_s22 = smov [#allocation5]  }
   0x7   :  { %s31_s23 = sshll.u32 %s220_s22, 4  ;;  %s32_s23 = int_to_ptr.vmem [resolvable:$true] %s31_s23 }
   0x8   :  { %34 = dma.hbm_to_vmem [thread:$0]  %s30_s19, 16, %s32_s23, [#allocation6]  }
   0x9   :  { %211 = dma.done.wait [#allocation3], 256  }
   0xa   :  { %212 = vsyncadd [#allocation3], 4294967040 }
   0xb   :  { %213 = dma.done.wait [#allocation6], 16  }
   0xc   :  { %214 = vsyncadd [#allocation6], 4294967280  ;;  %v47_v0 = vlaneseq  ;;  %v45_v2 = vld [vmem:[#allocation2] sm:$0xff]  ;;  %v46_v4 = vld [vmem:[#allocation2 + $0x8] sm:$0xff]  ;;  %s221_s24 = smov [#allocation7]   ;;  %s114_s28 = sshll.u32 %s267_s3, 4  ;;  %s115_s28 = int_to_ptr.hbm [resolvable:$true] %s114_s28 }
   0xd   :  { %v133_v30 = vld [vmem:[#allocation5] ss:$0 sm:$0xff]  ;;  %v134_v34 = vld [vmem:[%s266_s2] ss:$0 sm:$0xff]  ;;  %s112_s25 = sshll.u32 %s221_s24, 4  ;;  %s113_s25 = int_to_ptr.vmem [resolvable:$true] %s112_s25 }
   0xe   :  { %v48_v1 = vand.u32 127, %v47_v0 }
  0x10   :  { %vm49_vm0 = vcmp.lt.s32.totalorder %v48_v1, 32 }
  0x11   :  { %v50_v3 = vsel %vm49_vm0, %v45_v2, 0.0  ;;  %v51_v5 = vsel %vm49_vm0, %v46_v4, 0.0 }
  0x12   :  { %52 = vadd.xlane.f32.xlu0 %v50_v3 }
  0x1a   :  { %54 = vadd.xlane.f32.xlu0 %v51_v5 }
  0x85   :  { %v53_v6 = vpop.xlane.xlu0 %52 }
  0x86   :  { %v56_v7 = vmul.f32 0.03125, %v53_v6 }
  0x88   :  { %v58_v8 = vsub.f32 %v50_v3, %v56_v7 }
  0x8a   :  { %v60_v9 = vsel %vm49_vm0, %v58_v8, 0.0 }
  0x8b   :  { %v62_v10 = vmul.f32 %v60_v9, %v60_v9 }
  0x8d   :  { %64 = vadd.xlane.f32.xlu1 %v62_v10  ;;  %v55_v11 = vpop.xlane.xlu0 %54 }
  0x8e   :  { %v57_v12 = vmul.f32 0.03125, %v55_v11 }
  0x90   :  { %v59_v13 = vsub.f32 %v51_v5, %v57_v12 }
  0x92   :  { %v61_v14 = vsel %vm49_vm0, %v59_v13, 0.0 }
  0x93   :  { %v63_v15 = vmul.f32 %v61_v14, %v61_v14 }
  0x95   :  { %66 = vadd.xlane.f32.xlu1 %v63_v15 }
 0x100   :  { %v65_v16 = vpop.xlane.xlu1 %64 }
 0x101   :  { %v68_v17 = vmul.f32 0.03125, %v65_v16 }
 0x103   :  { %v70_v18 = vadd.f32 1e-05, %v68_v17 }
 0x105   :  { %135 = vrsqrt.f32 %v70_v18  ;;  %vm78_vm2 = vweird.f32 %v70_v18 }
 0x108   :  { %v67_v19 = vpop.xlane.xlu1 %66 }
 0x109   :  { %v69_v20 = vmul.f32 0.03125, %v67_v19 }
 0x10b   :  { %v136_v21 = vpop.eup %135  ;;  %v71_v22 = vadd.f32 1e-05, %v69_v20 }
 0x10c   :  { %v73_v23 = vmul.f32 %v136_v21, %v70_v18  ;;  %vm79_vm1 = vweird.f32 %v136_v21 }
 0x10d   :  { %137 = vrsqrt.f32 %v71_v22  ;;  %vm80_vm3 = vmor %vm78_vm2, %vm79_vm1  ;;  %vm88_vm5 = vweird.f32 %v71_v22 }
 0x10e   :  { %v74_v24 = vmul.f32 %v136_v21, %v73_v23 }
 0x110   :  { %v75_v25 = vmul.f32 0.5, %v74_v24 }
 0x112   :  { %v76_v26 = vsub.f32 1.5, %v75_v25 }
 0x113   :  { %v138_v27 = vpop.eup %137 }
 0x114   :  { %v77_v28 = vmul.f32 %v136_v21, %v76_v26  ;;  %v83_v29 = vmul.f32 %v138_v27, %v71_v22  ;;  %vm89_vm4 = vweird.f32 %v138_v27 }
 0x115   :  { %vm90_vm6 = vmor %vm88_vm5, %vm89_vm4 }
 0x116   :  { %v81_v31 = vsel %vm80_vm3, %v136_v21, %v77_v28  ;;  %v84_v32 = vmul.f32 %v138_v27, %v83_v29 }
 0x117   :  { %v92_v33 = vmul.f32 %v81_v31, %v60_v9 }
 0x118   :  { %v85_v35 = vmul.f32 0.5, %v84_v32 }
 0x119   :  { %v98_v36 = vmul.f32 %v133_v30, %v92_v33 }
 0x11a   :  { %v86_v37 = vsub.f32 1.5, %v85_v35 }
 0x11b   :  { %v104_v38 = vadd.f32 %v134_v34, %v98_v36 }
 0x11c   :  { %v87_v39 = vmul.f32 %v138_v27, %v86_v37 }
 0x11d   :  { %106 = vst [vmem:[#allocation7] sm:$0xff] %v104_v38 }
 0x11e   :  { %v91_v40 = vsel %vm90_vm6, %v138_v27, %v87_v39 }
 0x11f   :  { %v93_v41 = vmul.f32 %v91_v40, %v61_v14 }
 0x121   :  { %v99_v42 = vmul.f32 %v133_v30, %v93_v41 }
 0x123   :  { %v105_v43 = vadd.f32 %v134_v34, %v99_v42 }
 0x125   :  { %107 = vst [vmem:[#allocation7 + $0x8] sm:$0xff] %v105_v43 }
 0x126   :  { %120 = dma.vmem_to_hbm [thread:$0]  %s113_s25, 256, %s115_s28, [#allocation4], %s218_s20, %s218_s20, %s219_s21  }
 0x127   :  { %215 = dma.done.wait [#allocation4], 256  }
 0x128   :  { %216 = vsyncadd [#allocation4], 4294967040 }
 0x129   :  { %125 = vsyncpa [#allocation3], 1 }
 0x12a   :  { %126 = vsyncpa [#allocation6], 1 }
 0x12b   :  { %127 = vsyncpa [#allocation4], 1 }

</bundles_post_ra>
